<compile_context>
chip_gen: v5e
topology: v5e:2x2
jax: 0.10.0
libtpu: 0.0.40
codegen_flags: <defaults>
</compile_context>

<pallas_src>
import functools
import math

import jax
import jax.numpy as jnp
from jax.experimental import pallas as pl
from jax.experimental.pallas import tpu as pltpu

COMPUTE_DTYPE = jnp.float32   # set to jnp.bfloat16 on v6e/v7x (keep stats f32)


# ----------------------------------------------------------------------------
# Tiling helpers
# ----------------------------------------------------------------------------
def _pick_tile(dim, cap, align):
    """Largest tile <= cap that is a multiple of `align` and (ideally) divides
    `dim`; if dim <= cap use the full dim (always legal)."""
    if dim <= cap:
        return dim
    for t in range(cap, align - 1, -align):
        if dim % t == 0:
            return t
    return cap  # partial edge block, handled by Pallas masking


def _pick_bh_block(bh):
    """Pack several (batch*head) slices per grid step to amortize per-step
    overhead, but keep >= 2 grid steps so both v7x TensorCores get work."""
    for blk in (8, 4, 2, 1):
        if bh % blk == 0 and bh // blk >= 2:
            return blk
    return bh  # bh == 1


# ----------------------------------------------------------------------------
# Tiled linear (bias) kernel: y = x @ w.T + b, w kept in (Dout, Din) layout
# ----------------------------------------------------------------------------
def _linear_kernel(x_ref, w_ref, b_ref, o_ref, *, compute_dtype):
    x = x_ref[...].astype(compute_dtype)          # (TM, Din)
    w = w_ref[...].astype(compute_dtype)          # (TN, Din)
    acc = jax.lax.dot_general(
        x, w,
        dimension_numbers=(((1,), (1,)), ((), ())),   # contract Din with Din
        preferred_element_type=jnp.float32,
    )                                              # (TM, TN)
    o_ref[...] = (acc + b_ref[...]).astype(o_ref.dtype)


def pallas_linear(x2d, w, b, *, compute_dtype=COMPUTE_DTYPE):
    """x2d: (N, Din); w: (Dout, Din) [torch layout, not transposed]; b: (Dout,)."""
    n, d_in = x2d.shape
    d_out = w.shape[0]
    tm = _pick_tile(n, 512, 8)
    tn = _pick_tile(d_out, 512, 128)
    grid = (pl.cdiv(n, tm), pl.cdiv(d_out, tn))
    cost = pl.CostEstimate(
        flops=2 * n * d_in * d_out,
        transcendentals=0,
        bytes_accessed=4 * (n * d_in + d_out * d_in + d_out + n * d_out),
    )
    kernel = functools.partial(_linear_kernel, compute_dtype=compute_dtype)
    return pl.pallas_call(
        kernel,
        out_shape=jax.ShapeDtypeStruct((n, d_out), jnp.float32),
        grid=grid,
        in_specs=[
            pl.BlockSpec((tm, d_in), lambda i, j: (i, 0)),
            pl.BlockSpec((tn, d_in), lambda i, j: (j, 0)),
            pl.BlockSpec((1, tn), lambda i, j: (0, j)),
        ],
        out_specs=pl.BlockSpec((tm, tn), lambda i, j: (i, j)),
        compiler_params=pltpu.CompilerParams(
            dimension_semantics=("parallel", "parallel")),
        cost_estimate=cost,
    )(x2d, w, b.reshape(1, d_out))


# ----------------------------------------------------------------------------
# Bidirectional attention core (per block of batch*head slices)
# ----------------------------------------------------------------------------
def _bi_attn_kernel(q_ref, k_ref, vv_ref, vl_ref, ov_ref, ol_ref, *,
                    compute_dtype):
    q = q_ref[...].astype(compute_dtype)     # (B, tgt, hd), already scaled
    k = k_ref[...].astype(compute_dtype)     # (B, src, hd)
    vv = vv_ref[...].astype(compute_dtype)   # (B, tgt, hd)
    vl = vl_ref[...].astype(compute_dtype)   # (B, src, hd)

    s = jnp.einsum("bqd,bkd->bqk", q, k,
                   preferred_element_type=jnp.float32)      # (B, tgt, src)
    s = jnp.clip(s, -50000.0, 50000.0)

    # vision -> language: softmax over src; normalization deferred past PV.
    m_v = jnp.max(s, axis=-1, keepdims=True)                 # (B, tgt, 1)
    p_v = jnp.exp(s - m_v)                                    # (B, tgt, src)
    sum_v = jnp.sum(p_v, axis=-1, keepdims=True)              # (B, tgt, 1)
    ov = jnp.einsum("bqk,bkd->bqd", p_v.astype(compute_dtype), vl,
                    preferred_element_type=jnp.float32)       # (B, tgt, hd)
    ov_ref[...] = (ov * pl.reciprocal(sum_v, approx=True)).astype(ov_ref.dtype)

    # language -> vision: softmax of s.T rows == column softmax of s; computed
    # without materializing s.T (the MXU contracts over tgt directly).
    # (The reference's extra clamp after the max-subtraction is a no-op here:
    #  values <= -50000 already underflow exp to 0.)
    m_l = jnp.max(s, axis=1, keepdims=True)                   # (B, 1, src)
    p_l = jnp.exp(s - m_l)                                     # (B, tgt, src)
    sum_l = jnp.sum(p_l, axis=1)                               # (B, src)
    ol = jnp.einsum("bqk,bqd->bkd", p_l.astype(compute_dtype), vv,
                    preferred_element_type=jnp.float32)        # (B, src, hd)
    inv_l = pl.reciprocal(sum_l, approx=True)[:, :, None]      # (B, src, 1)
    ol_ref[...] = (ol * inv_l).astype(ol_ref.dtype)


def pallas_bi_attention(q, k, vv, vl, *, compute_dtype=COMPUTE_DTYPE):
    """q/vv: (BH, tgt, hd); k/vl: (BH, src, hd)."""
    bh, tgt, hd = q.shape
    src = k.shape[1]
    blk = _pick_bh_block(bh)
    grid = (bh // blk,)
    cost = pl.CostEstimate(
        flops=6 * bh * tgt * src * hd,                 # QK^T + two PV matmuls
        transcendentals=2 * bh * tgt * src,            # two exps on the scores
        bytes_accessed=4 * (3 * bh * hd * (tgt + src)),
    )
    kernel = functools.partial(_bi_attn_kernel, compute_dtype=compute_dtype)
    return pl.pallas_call(
        kernel,
        out_shape=(
            jax.ShapeDtypeStruct((bh, tgt, hd), jnp.float32),
            jax.ShapeDtypeStruct((bh, src, hd), jnp.float32),
        ),
        grid=grid,
        in_specs=[
            pl.BlockSpec((blk, tgt, hd), lambda i: (i, 0, 0)),
            pl.BlockSpec((blk, src, hd), lambda i: (i, 0, 0)),
            pl.BlockSpec((blk, tgt, hd), lambda i: (i, 0, 0)),
            pl.BlockSpec((blk, src, hd), lambda i: (i, 0, 0)),
        ],
        out_specs=(
            pl.BlockSpec((blk, tgt, hd), lambda i: (i, 0, 0)),
            pl.BlockSpec((blk, src, hd), lambda i: (i, 0, 0)),
        ),
        compiler_params=pltpu.CompilerParams(
            dimension_semantics=("parallel",)),
        cost_estimate=cost,
    )(q, k, vv, vl)


# ----------------------------------------------------------------------------
# Module wrapper (head split/merge & weight fusion are plain-JAX glue)
# ----------------------------------------------------------------------------
def bi_multi_head_attention(v, l, params, num_heads):
    bsz, tgt_len, v_dim = v.shape
    _, src_len, l_dim = l.shape
    embed_dim = params["v_proj_w"].shape[0]
    head_dim = embed_dim // num_heads
    scale = head_dim ** (-0.5)

    # Fuse projections sharing an input; fold the q scale into v_proj w/b.
    w_v_fused = jnp.concatenate(
        [params["v_proj_w"] * scale, params["values_v_proj_w"]], axis=0)
    b_v_fused = jnp.concatenate(
        [params["v_proj_b"] * scale, params["values_v_proj_b"]], axis=0)
    w_l_fused = jnp.concatenate(
        [params["l_proj_w"], params["values_l_proj_w"]], axis=0)
    b_l_fused = jnp.concatenate(
        [params["l_proj_b"], params["values_l_proj_b"]], axis=0)

    v2d = v.reshape(bsz * tgt_len, v_dim)
    l2d = l.reshape(bsz * src_len, l_dim)

    qv = pallas_linear(v2d, w_v_fused, b_v_fused)     # (bsz*tgt, 2*embed)
    kl = pallas_linear(l2d, w_l_fused, b_l_fused)     # (bsz*src, 2*embed)

    # Single transpose per fused projection: split q|values and heads at once.
    qv = qv.reshape(bsz, tgt_len, 2, num_heads, head_dim)
    qv = jnp.transpose(qv, (2, 0, 3, 1, 4)).reshape(
        2, bsz * num_heads, tgt_len, head_dim)
    q, val_v = qv[0], qv[1]
    kl = kl.reshape(bsz, src_len, 2, num_heads, head_dim)
    kl = jnp.transpose(kl, (2, 0, 3, 1, 4)).reshape(
        2, bsz * num_heads, src_len, head_dim)
    k, val_l = kl[0], kl[1]

    attn_out_v, attn_out_l = pallas_bi_attention(q, k, val_v, val_l)

    # Merge heads back to (bsz*seq, embed).
    attn_out_v = jnp.transpose(
        attn_out_v.reshape(bsz, num_heads, tgt_len, head_dim),
        (0, 2, 1, 3)).reshape(bsz * tgt_len, embed_dim)
    attn_out_l = jnp.transpose(
        attn_out_l.reshape(bsz, num_heads, src_len, head_dim),
        (0, 2, 1, 3)).reshape(bsz * src_len, embed_dim)

    out_v = pallas_linear(
        attn_out_v, params["out_v_proj_w"], params["out_v_proj_b"]
    ).reshape(bsz, tgt_len, v_dim)
    out_l = pallas_linear(
        attn_out_l, params["out_l_proj_w"], params["out_l_proj_b"]
    ).reshape(bsz, src_len, l_dim)
    return out_v, out_l


bi_multi_head_attention_jit = jax.jit(bi_multi_head_attention,
                                      static_argnums=(3,))


# ----------------------------------------------------------------------------
# Pure-JAX reference (mirrors the PyTorch forward exactly)
# ----------------------------------------------------------------------------
def reference(v, l, params, num_heads):
    bsz, tgt_len, v_dim = v.shape
    _, src_len, l_dim = l.shape
    embed_dim = params["v_proj_w"].shape[0]
    head_dim = embed_dim // num_heads
    scale = head_dim ** (-0.5)

    def lin(x, w, b):
        return x @ w.T + b

    q = lin(v, params["v_proj_w"], params["v_proj_b"]) * scale
    k = lin(l, params["l_proj_w"], params["l_proj_b"])
    vv = lin(v, params["values_v_proj_w"], params["values_v_proj_b"])
    vl = lin(l, params["values_l_proj_w"], params["values_l_proj_b"])

    def sh(x, seq):
        return jnp.transpose(
            x.reshape(bsz, seq, num_heads, head_dim), (0, 2, 1, 3)
        ).reshape(bsz * num_heads, seq, head_dim)

    q, k, vv, vl = sh(q, tgt_len), sh(k, src_len), sh(vv, tgt_len), sh(vl, src_len)
    s = jnp.einsum("bqd,bkd->bqk", q, k)
    s = jnp.clip(s, -50000.0, 50000.0)
    attn_v = jax.nn.softmax(s, axis=-1)
    sT = jnp.swapaxes(s, 1, 2)
    aL = jnp.clip(sT - jnp.max(sT, axis=-1, keepdims=True), -50000.0, 50000.0)
    attn_l = jax.nn.softmax(aL, axis=-1)
    ov = jnp.einsum("bqk,bkd->bqd", attn_v, vl)
    ol = jnp.einsum("bkq,bqd->bkd", attn_l, vv)
    ov = jnp.transpose(ov.reshape(bsz, num_heads, tgt_len, head_dim),
                       (0, 2, 1, 3)).reshape(bsz, tgt_len, embed_dim)
    ol = jnp.transpose(ol.reshape(bsz, num_heads, src_len, head_dim),
                       (0, 2, 1, 3)).reshape(bsz, src_len, embed_dim)
    return (
        lin(ov, params["out_v_proj_w"], params["out_v_proj_b"]),
        lin(ol, params["out_l_proj_w"], params["out_l_proj_b"]),
    )


# ----------------------------------------------------------------------------
# Deterministic parameter init (xavier_uniform weights, zero biases)
# ----------------------------------------------------------------------------
def xavier_uniform(key, out_dim, in_dim):
    bound = math.sqrt(6.0 / (in_dim + out_dim))
    return jax.random.uniform(key, (out_dim, in_dim), jnp.float32, -bound, bound)


def init_params(key, v_dim, l_dim, embed_dim):
    keys = jax.random.split(key, 6)
    return {
        "v_proj_w": xavier_uniform(keys[0], embed_dim, v_dim),
        "v_proj_b": jnp.zeros((embed_dim,), jnp.float32),
        "l_proj_w": xavier_uniform(keys[1], embed_dim, l_dim),
        "l_proj_b": jnp.zeros((embed_dim,), jnp.float32),
        "values_v_proj_w": xavier_uniform(keys[2], embed_dim, v_dim),
        "values_v_proj_b": jnp.zeros((embed_dim,), jnp.float32),
        "values_l_proj_w": xavier_uniform(keys[3], embed_dim, l_dim),
        "values_l_proj_b": jnp.zeros((embed_dim,), jnp.float32),
        "out_v_proj_w": xavier_uniform(keys[4], v_dim, embed_dim),
        "out_v_proj_b": jnp.zeros((v_dim,), jnp.float32),
        "out_l_proj_w": xavier_uniform(keys[5], l_dim, embed_dim),
        "out_l_proj_b": jnp.zeros((l_dim,), jnp.float32),
    }


if __name__ == "__main__":
    bsz, tgt_len, src_len = 2, 16, 8
    v_dim, l_dim, embed_dim, num_heads = 32, 16, 32, 4

    key = jax.random.PRNGKey(0)
    k_v, k_l, k_p = jax.random.split(key, 3)
    v = jax.random.normal(k_v, (bsz, tgt_len, v_dim), jnp.float32)
    l = jax.random.normal(k_l, (bsz, src_len, l_dim), jnp.float32)
    params = init_params(k_p, v_dim, l_dim, embed_dim)

    out_v, out_l = bi_multi_head_attention_jit(v, l, params, num_heads)
    out_v = jax.block_until_ready(out_v)
    out_l = jax.block_until_ready(out_l)

    ref_v, ref_l = reference(v, l, params, num_heads)
    # 5e-3 tolerance covers the EUP approximate reciprocal used for the
    # deferred softmax normalization; everything else is exact f32.
    assert jnp.allclose(out_v, ref_v, atol=5e-3, rtol=5e-3), "out_v mismatch"
    assert jnp.allclose(out_l, ref_l, atol=5e-3, rtol=5e-3), "out_l mismatch"

    print("KERNEL_OK")
</pallas_src>

<mosaic_0001>
module attributes {stable_mosaic.version = 11 : i64} {
  func.func @_linear_kernel(%arg0: i32, %arg1: i32, %arg2: memref<16x16xf32, #tpu.memory_space<vmem>>, %arg3: memref<64x16xf32, #tpu.memory_space<vmem>>, %arg4: memref<1x64xf32, #tpu.memory_space<vmem>>, %arg5: memref<16x64xf32, #tpu.memory_space<vmem>>) attributes {dimension_semantics = [#tpu.dimension_semantics<parallel>, #tpu.dimension_semantics<parallel>], iteration_bounds = array<i64: 1, 1>, scalar_prefetch = 0 : i64, scratch_operands = 0 : i64, tpu.core_type = #tpu.core_type<tc>, window_params = [{transform_indices = @transform_0, window_bounds = array<i64: 16, 16>}, {transform_indices = @transform_1, window_bounds = array<i64: 64, 16>}, {transform_indices = @transform_2, window_bounds = array<i64: 1, 64>}, {transform_indices = @transform_3, window_bounds = array<i64: 16, 64>}]} {
    %c0 = arith.constant 0 : index
    %c0_0 = arith.constant 0 : index
    %0 = vector.load %arg2[%c0, %c0_0] : memref<16x16xf32, #tpu.memory_space<vmem>>, vector<16x16xf32>
    %c0_1 = arith.constant 0 : index
    %c0_2 = arith.constant 0 : index
    %1 = vector.load %arg3[%c0_1, %c0_2] : memref<64x16xf32, #tpu.memory_space<vmem>>, vector<64x16xf32>
    %cst = arith.constant dense<0.000000e+00> : vector<16x64xf32>
    %2 = tpu.matmul %0, %1, %cst {dimension_numbers = #tpu.dot_dimension_numbers<[1], [1], [0], [0], [0, 0, 1, 0], [], []>} : vector<16x16xf32>, vector<64x16xf32>, vector<16x64xf32> -> vector<16x64xf32>
    %c0_3 = arith.constant 0 : index
    %c0_4 = arith.constant 0 : index
    %3 = vector.load %arg4[%c0_3, %c0_4] : memref<1x64xf32, #tpu.memory_space<vmem>>, vector<1x64xf32>
    %4 = vector.broadcast %3 : vector<1x64xf32> to vector<16x64xf32>
    %5 = arith.addf %2, %4 : vector<16x64xf32>
    %c0_5 = arith.constant 0 : index
    %c0_6 = arith.constant 0 : index
    %6 = vector.load %arg5[%c0_5, %c0_6] : memref<16x64xf32, #tpu.memory_space<vmem>>, vector<16x64xf32>
    tpu.vector_store %arg5[%c0_5, %c0_6], %5 {strides = array<i32>} : memref<16x64xf32, #tpu.memory_space<vmem>>, vector<16x64xf32>,
    return
  }
  func.func @transform_0(%arg0: i32, %arg1: i32) -> (i32, i32) {
    %c0_i32 = arith.constant 0 : i32
    %c0_i32_0 = arith.constant 0 : i32
    return %arg0, %c0_i32 : i32, i32
  }
  func.func @transform_1(%arg0: i32, %arg1: i32) -> (i32, i32) {
    %c0_i32 = arith.constant 0 : i32
    %c0_i32_0 = arith.constant 0 : i32
    return %arg1, %c0_i32 : i32, i32
  }
  func.func @transform_2(%arg0: i32, %arg1: i32) -> (i32, i32) {
    %c0_i32 = arith.constant 0 : i32
    %c0_i32_0 = arith.constant 0 : i32
    return %c0_i32, %arg1 : i32, i32
  }
  func.func @transform_3(%arg0: i32, %arg1: i32) -> (i32, i32) {
    %c0_i32 = arith.constant 0 : i32
    return %arg0, %arg1 : i32, i32
  }
}

module attributes {stable_mosaic.version = 11 : i64} {
  func.func @_linear_kernel(%arg0: i32, %arg1: i32, %arg2: memref<32x32xf32, #tpu.memory_space<vmem>>, %arg3: memref<64x32xf32, #tpu.memory_space<vmem>>, %arg4: memref<1x64xf32, #tpu.memory_space<vmem>>, %arg5: memref<32x64xf32, #tpu.memory_space<vmem>>) attributes {dimension_semantics = [#tpu.dimension_semantics<parallel>, #tpu.dimension_semantics<parallel>], iteration_bounds = array<i64: 1, 1>, scalar_prefetch = 0 : i64, scratch_operands = 0 : i64, tpu.core_type = #tpu.core_type<tc>, window_params = [{transform_indices = @transform_0, window_bounds = array<i64: 32, 32>}, {transform_indices = @transform_1, window_bounds = array<i64: 64, 32>}, {transform_indices = @transform_2, window_bounds = array<i64: 1, 64>}, {transform_indices = @transform_3, window_bounds = array<i64: 32, 64>}]} {
    %c0 = arith.constant 0 : index
    %c0_0 = arith.constant 0 : index
    %0 = vector.load %arg2[%c0, %c0_0] : memref<32x32xf32, #tpu.memory_space<vmem>>, vector<32x32xf32>
    %c0_1 = arith.constant 0 : index
    %c0_2 = arith.constant 0 : index
    %1 = vector.load %arg3[%c0_1, %c0_2] : memref<64x32xf32, #tpu.memory_space<vmem>>, vector<64x32xf32>
    %cst = arith.constant dense<0.000000e+00> : vector<32x64xf32>
    %2 = tpu.matmul %0, %1, %cst {dimension_numbers = #tpu.dot_dimension_numbers<[1], [1], [0], [0], [0, 0, 1, 0], [], []>} : vector<32x32xf32>, vector<64x32xf32>, vector<32x64xf32> -> vector<32x64xf32>
    %c0_3 = arith.constant 0 : index
    %c0_4 = arith.constant 0 : index
    %3 = vector.load %arg4[%c0_3, %c0_4] : memref<1x64xf32, #tpu.memory_space<vmem>>, vector<1x64xf32>
    %4 = vector.broadcast %3 : vector<1x64xf32> to vector<32x64xf32>
    %5 = arith.addf %2, %4 : vector<32x64xf32>
    %c0_5 = arith.constant 0 : index
    %c0_6 = arith.constant 0 : index
    %6 = vector.load %arg5[%c0_5, %c0_6] : memref<32x64xf32, #tpu.memory_space<vmem>>, vector<32x64xf32>
    tpu.vector_store %arg5[%c0_5, %c0_6], %5 {strides = array<i32>} : memref<32x64xf32, #tpu.memory_space<vmem>>, vector<32x64xf32>,
    return
  }
  func.func @transform_0(%arg0: i32, %arg1: i32) -> (i32, i32) {
    %c0_i32 = arith.constant 0 : i32
    %c0_i32_0 = arith.constant 0 : i32
    return %arg0, %c0_i32 : i32, i32
  }
  func.func @transform_1(%arg0: i32, %arg1: i32) -> (i32, i32) {
    %c0_i32 = arith.constant 0 : i32
    %c0_i32_0 = arith.constant 0 : i32
    return %arg1, %c0_i32 : i32, i32
  }
  func.func @transform_2(%arg0: i32, %arg1: i32) -> (i32, i32) {
    %c0_i32 = arith.constant 0 : i32
    %c0_i32_0 = arith.constant 0 : i32
    return %c0_i32, %arg1 : i32, i32
  }
  func.func @transform_3(%arg0: i32, %arg1: i32) -> (i32, i32) {
    %c0_i32 = arith.constant 0 : i32
    return %arg0, %arg1 : i32, i32
  }
}

module attributes {stable_mosaic.version = 11 : i64} {
  func.func @_bi_attn_kernel(%arg0: i32, %arg1: memref<4x16x8xf32, #tpu.memory_space<vmem>>, %arg2: memref<4x8x8xf32, #tpu.memory_space<vmem>>, %arg3: memref<4x16x8xf32, #tpu.memory_space<vmem>>, %arg4: memref<4x8x8xf32, #tpu.memory_space<vmem>>, %arg5: memref<4x16x8xf32, #tpu.memory_space<vmem>>, %arg6: memref<4x8x8xf32, #tpu.memory_space<vmem>>) attributes {dimension_semantics = [#tpu.dimension_semantics<parallel>], iteration_bounds = array<i64: 2>, scalar_prefetch = 0 : i64, scratch_operands = 0 : i64, tpu.core_type = #tpu.core_type<tc>, window_params = [{transform_indices = @transform_0, window_bounds = array<i64: 4, 16, 8>}, {transform_indices = @transform_1, window_bounds = array<i64: 4, 8, 8>}, {transform_indices = @transform_2, window_bounds = array<i64: 4, 16, 8>}, {transform_indices = @transform_3, window_bounds = array<i64: 4, 8, 8>}, {transform_indices = @transform_4, window_bounds = array<i64: 4, 16, 8>}, {transform_indices = @transform_5, window_bounds = array<i64: 4, 8, 8>}]} {
    %c0 = arith.constant 0 : index
    %c0_0 = arith.constant 0 : index
    %c0_1 = arith.constant 0 : index
    %0 = vector.load %arg1[%c0, %c0_0, %c0_1] : memref<4x16x8xf32, #tpu.memory_space<vmem>>, vector<4x16x8xf32>
    %c0_2 = arith.constant 0 : index
    %c0_3 = arith.constant 0 : index
    %c0_4 = arith.constant 0 : index
    %1 = vector.load %arg2[%c0_2, %c0_3, %c0_4] : memref<4x8x8xf32, #tpu.memory_space<vmem>>, vector<4x8x8xf32>
    %c0_5 = arith.constant 0 : index
    %c0_6 = arith.constant 0 : index
    %c0_7 = arith.constant 0 : index
    %2 = vector.load %arg3[%c0_5, %c0_6, %c0_7] : memref<4x16x8xf32, #tpu.memory_space<vmem>>, vector<4x16x8xf32>
    %c0_8 = arith.constant 0 : index
    %c0_9 = arith.constant 0 : index
    %c0_10 = arith.constant 0 : index
    %3 = vector.load %arg4[%c0_8, %c0_9, %c0_10] : memref<4x8x8xf32, #tpu.memory_space<vmem>>, vector<4x8x8xf32>
    "tpu.trace_start"() <{level = 10 : i32, message = "bqd,bkd->bqk"}> : () -> ()
    %cst = arith.constant dense<0.000000e+00> : vector<4x16x8xf32>
    %4 = tpu.matmul %0, %1, %cst {dimension_numbers = #tpu.dot_dimension_numbers<[2], [2], [1], [1], [0, 0, 0, 1, 1, 1], [0], [0]>} : vector<4x16x8xf32>, vector<4x8x8xf32>, vector<4x16x8xf32> -> vector<4x16x8xf32>
    %cst_11 = arith.constant -5.000000e+04 : f32
    %cst_12 = arith.constant 5.000000e+04 : f32
    "tpu.trace_stop"() : () -> ()
    %5 = vector.broadcast %cst_11 : f32 to vector<4x16x8xf32>
    %6 = arith.maximumf %5, %4 : vector<4x16x8xf32>
    %7 = vector.broadcast %cst_12 : f32 to vector<4x16x8xf32>
    %8 = arith.minimumf %7, %6 : vector<4x16x8xf32>
    %cst_13 = arith.constant dense<0xFF800000> : vector<4x16xf32>
    %9 = vector.multi_reduction <maximumf>, %8, %cst_13 [2] : vector<4x16x8xf32> to vector<4x16xf32>
    %10 = vector.shape_cast %9 : vector<4x16xf32> to vector<4x16x1xf32>
    %11 = vector.broadcast %10 : vector<4x16x1xf32> to vector<4x16x8xf32>
    %12 = arith.subf %8, %11 : vector<4x16x8xf32>
    %13 = math.exp %12 : vector<4x16x8xf32>
    %cst_14 = arith.constant dense<0.000000e+00> : vector<4x16xf32>
    %14 = vector.multi_reduction <add>, %13, %cst_14 [2] : vector<4x16x8xf32> to vector<4x16xf32>
    %15 = vector.shape_cast %14 : vector<4x16xf32> to vector<4x16x1xf32>
    "tpu.trace_start"() <{level = 10 : i32, message = "bqk,bkd->bqd"}> : () -> ()
    %cst_15 = arith.constant dense<0.000000e+00> : vector<4x16x8xf32>
    %16 = tpu.matmul %13, %3, %cst_15 {dimension_numbers = #tpu.dot_dimension_numbers<[2], [1], [1], [2], [0, 0, 0, 1, 1, 2], [0], [0]>} : vector<4x16x8xf32>, vector<4x8x8xf32>, vector<4x16x8xf32> -> vector<4x16x8xf32>
    "tpu.trace_stop"() : () -> ()
    %17 = tpu.reciprocal %15 {approx = true} : vector<4x16x1xf32> -> vector<4x16x1xf32>
    %18 = vector.broadcast %17 : vector<4x16x1xf32> to vector<4x16x8xf32>
    %19 = arith.mulf %16, %18 : vector<4x16x8xf32>
    %c0_16 = arith.constant 0 : index
    %c0_17 = arith.constant 0 : index
    %c0_18 = arith.constant 0 : index
    %20 = vector.load %arg5[%c0_16, %c0_17, %c0_18] : memref<4x16x8xf32, #tpu.memory_space<vmem>>, vector<4x16x8xf32>
    tpu.vector_store %arg5[%c0_16, %c0_17, %c0_18], %19 {strides = array<i32>} : memref<4x16x8xf32, #tpu.memory_space<vmem>>, vector<4x16x8xf32>,
    %cst_19 = arith.constant dense<0xFF800000> : vector<4x8xf32>
    %21 = vector.multi_reduction <maximumf>, %8, %cst_19 [1] : vector<4x16x8xf32> to vector<4x8xf32>
    %22 = vector.shape_cast %21 : vector<4x8xf32> to vector<4x1x8xf32>
    %23 = vector.broadcast %22 : vector<4x1x8xf32> to vector<4x16x8xf32>
    %24 = arith.subf %8, %23 : vector<4x16x8xf32>
    %25 = math.exp %24 : vector<4x16x8xf32>
    %cst_20 = arith.constant dense<0.000000e+00> : vector<4x8xf32>
    %26 = vector.multi_reduction <add>, %25, %cst_20 [1] : vector<4x16x8xf32> to vector<4x8xf32>
    "tpu.trace_start"() <{level = 10 : i32, message = "bqk,bqd->bkd"}> : () -> ()
    %cst_21 = arith.constant dense<0.000000e+00> : vector<4x8x8xf32>
    %27 = tpu.matmul %25, %2, %cst_21 {dimension_numbers = #tpu.dot_dimension_numbers<[1], [1], [2], [2], [0, 0, 0, 2, 1, 2], [0], [0]>} : vector<4x16x8xf32>, vector<4x16x8xf32>, vector<4x8x8xf32> -> vector<4x8x8xf32>
    "tpu.trace_stop"() : () -> ()
    %28 = tpu.reciprocal %26 {approx = true} : vector<4x8xf32> -> vector<4x8xf32>
    %29 = vector.shape_cast %28 : vector<4x8xf32> to vector<4x8x1xf32>
    %30 = vector.broadcast %29 : vector<4x8x1xf32> to vector<4x8x8xf32>
    %31 = arith.mulf %27, %30 : vector<4x8x8xf32>
    %c0_22 = arith.constant 0 : index
    %c0_23 = arith.constant 0 : index
    %c0_24 = arith.constant 0 : index
    %32 = vector.load %arg6[%c0_22, %c0_23, %c0_24] : memref<4x8x8xf32, #tpu.memory_space<vmem>>, vector<4x8x8xf32>
    tpu.vector_store %arg6[%c0_22, %c0_23, %c0_24], %31 {strides = array<i32>} : memref<4x8x8xf32, #tpu.memory_space<vmem>>, vector<4x8x8xf32>,
    return
  }
  func.func @transform_0(%arg0: i32) -> (i32, i32, i32) {
    %c0_i32 = arith.constant 0 : i32
    %c0_i32_0 = arith.constant 0 : i32
    %c0_i32_1 = arith.constant 0 : i32
    return %arg0, %c0_i32, %c0_i32_0 : i32, i32, i32
  }
  func.func @transform_1(%arg0: i32) -> (i32, i32, i32) {
    %c0_i32 = arith.constant 0 : i32
    %c0_i32_0 = arith.constant 0 : i32
    %c0_i32_1 = arith.constant 0 : i32
    return %arg0, %c0_i32, %c0_i32_0 : i32, i32, i32
  }
  func.func @transform_2(%arg0: i32) -> (i32, i32, i32) {
    %c0_i32 = arith.constant 0 : i32
    %c0_i32_0 = arith.constant 0 : i32
    %c0_i32_1 = arith.constant 0 : i32
    return %arg0, %c0_i32, %c0_i32_0 : i32, i32, i32
  }
  func.func @transform_3(%arg0: i32) -> (i32, i32, i32) {
    %c0_i32 = arith.constant 0 : i32
    %c0_i32_0 = arith.constant 0 : i32
    %c0_i32_1 = arith.constant 0 : i32
    return %arg0, %c0_i32, %c0_i32_0 : i32, i32, i32
  }
  func.func @transform_4(%arg0: i32) -> (i32, i32, i32) {
    %c0_i32 = arith.constant 0 : i32
    %c0_i32_0 = arith.constant 0 : i32
    %c0_i32_1 = arith.constant 0 : i32
    return %arg0, %c0_i32, %c0_i32_0 : i32, i32, i32
  }
  func.func @transform_5(%arg0: i32) -> (i32, i32, i32) {
    %c0_i32 = arith.constant 0 : i32
    %c0_i32_0 = arith.constant 0 : i32
    %c0_i32_1 = arith.constant 0 : i32
    return %arg0, %c0_i32, %c0_i32_0 : i32, i32, i32
  }
}

module attributes {stable_mosaic.version = 11 : i64} {
  func.func @_linear_kernel(%arg0: i32, %arg1: i32, %arg2: memref<16x32xf32, #tpu.memory_space<vmem>>, %arg3: memref<16x32xf32, #tpu.memory_space<vmem>>, %arg4: memref<1x16xf32, #tpu.memory_space<vmem>>, %arg5: memref<16x16xf32, #tpu.memory_space<vmem>>) attributes {dimension_semantics = [#tpu.dimension_semantics<parallel>, #tpu.dimension_semantics<parallel>], iteration_bounds = array<i64: 1, 1>, scalar_prefetch = 0 : i64, scratch_operands = 0 : i64, tpu.core_type = #tpu.core_type<tc>, window_params = [{transform_indices = @transform_0, window_bounds = array<i64: 16, 32>}, {transform_indices = @transform_1, window_bounds = array<i64: 16, 32>}, {transform_indices = @transform_2, window_bounds = array<i64: 1, 16>}, {transform_indices = @transform_3, window_bounds = array<i64: 16, 16>}]} {
    %c0 = arith.constant 0 : index
    %c0_0 = arith.constant 0 : index
    %0 = vector.load %arg2[%c0, %c0_0] : memref<16x32xf32, #tpu.memory_space<vmem>>, vector<16x32xf32>
    %c0_1 = arith.constant 0 : index
    %c0_2 = arith.constant 0 : index
    %1 = vector.load %arg3[%c0_1, %c0_2] : memref<16x32xf32, #tpu.memory_space<vmem>>, vector<16x32xf32>
    %cst = arith.constant dense<0.000000e+00> : vector<16x16xf32>
    %2 = tpu.matmul %0, %1, %cst {dimension_numbers = #tpu.dot_dimension_numbers<[1], [1], [0], [0], [0, 0, 1, 0], [], []>} : vector<16x32xf32>, vector<16x32xf32>, vector<16x16xf32> -> vector<16x16xf32>
    %c0_3 = arith.constant 0 : index
    %c0_4 = arith.constant 0 : index
    %3 = vector.load %arg4[%c0_3, %c0_4] : memref<1x16xf32, #tpu.memory_space<vmem>>, vector<1x16xf32>
    %4 = vector.broadcast %3 : vector<1x16xf32> to vector<16x16xf32>
    %5 = arith.addf %2, %4 : vector<16x16xf32>
    %c0_5 = arith.constant 0 : index
    %c0_6 = arith.constant 0 : index
    %6 = vector.load %arg5[%c0_5, %c0_6] : memref<16x16xf32, #tpu.memory_space<vmem>>, vector<16x16xf32>
    tpu.vector_store %arg5[%c0_5, %c0_6], %5 {strides = array<i32>} : memref<16x16xf32, #tpu.memory_space<vmem>>, vector<16x16xf32>,
    return
  }
  func.func @transform_0(%arg0: i32, %arg1: i32) -> (i32, i32) {
    %c0_i32 = arith.constant 0 : i32
    %c0_i32_0 = arith.constant 0 : i32
    return %arg0, %c0_i32 : i32, i32
  }
  func.func @transform_1(%arg0: i32, %arg1: i32) -> (i32, i32) {
    %c0_i32 = arith.constant 0 : i32
    %c0_i32_0 = arith.constant 0 : i32
    return %arg1, %c0_i32 : i32, i32
  }
  func.func @transform_2(%arg0: i32, %arg1: i32) -> (i32, i32) {
    %c0_i32 = arith.constant 0 : i32
    %c0_i32_0 = arith.constant 0 : i32
    return %c0_i32, %arg1 : i32, i32
  }
  func.func @transform_3(%arg0: i32, %arg1: i32) -> (i32, i32) {
    %c0_i32 = arith.constant 0 : i32
    return %arg0, %arg1 : i32, i32
  }
}

module attributes {stable_mosaic.version = 11 : i64} {
  func.func @_linear_kernel(%arg0: i32, %arg1: i32, %arg2: memref<32x32xf32, #tpu.memory_space<vmem>>, %arg3: memref<32x32xf32, #tpu.memory_space<vmem>>, %arg4: memref<1x32xf32, #tpu.memory_space<vmem>>, %arg5: memref<32x32xf32, #tpu.memory_space<vmem>>) attributes {dimension_semantics = [#tpu.dimension_semantics<parallel>, #tpu.dimension_semantics<parallel>], iteration_bounds = array<i64: 1, 1>, scalar_prefetch = 0 : i64, scratch_operands = 0 : i64, tpu.core_type = #tpu.core_type<tc>, window_params = [{transform_indices = @transform_0, window_bounds = array<i64: 32, 32>}, {transform_indices = @transform_1, window_bounds = array<i64: 32, 32>}, {transform_indices = @transform_2, window_bounds = array<i64: 1, 32>}, {transform_indices = @transform_3, window_bounds = array<i64: 32, 32>}]} {
    %c0 = arith.constant 0 : index
    %c0_0 = arith.constant 0 : index
    %0 = vector.load %arg2[%c0, %c0_0] : memref<32x32xf32, #tpu.memory_space<vmem>>, vector<32x32xf32>
    %c0_1 = arith.constant 0 : index
    %c0_2 = arith.constant 0 : index
    %1 = vector.load %arg3[%c0_1, %c0_2] : memref<32x32xf32, #tpu.memory_space<vmem>>, vector<32x32xf32>
    %cst = arith.constant dense<0.000000e+00> : vector<32x32xf32>
    %2 = tpu.matmul %0, %1, %cst {dimension_numbers = #tpu.dot_dimension_numbers<[1], [1], [0], [0], [0, 0, 1, 0], [], []>} : vector<32x32xf32>, vector<32x32xf32>, vector<32x32xf32> -> vector<32x32xf32>
    %c0_3 = arith.constant 0 : index
    %c0_4 = arith.constant 0 : index
    %3 = vector.load %arg4[%c0_3, %c0_4] : memref<1x32xf32, #tpu.memory_space<vmem>>, vector<1x32xf32>
    %4 = vector.broadcast %3 : vector<1x32xf32> to vector<32x32xf32>
    %5 = arith.addf %2, %4 : vector<32x32xf32>
    %c0_5 = arith.constant 0 : index
    %c0_6 = arith.constant 0 : index
    %6 = vector.load %arg5[%c0_5, %c0_6] : memref<32x32xf32, #tpu.memory_space<vmem>>, vector<32x32xf32>
    tpu.vector_store %arg5[%c0_5, %c0_6], %5 {strides = array<i32>} : memref<32x32xf32, #tpu.memory_space<vmem>>, vector<32x32xf32>,
    return
  }
  func.func @transform_0(%arg0: i32, %arg1: i32) -> (i32, i32) {
    %c0_i32 = arith.constant 0 : i32
    %c0_i32_0 = arith.constant 0 : i32
    return %arg0, %c0_i32 : i32, i32
  }
  func.func @transform_1(%arg0: i32, %arg1: i32) -> (i32, i32) {
    %c0_i32 = arith.constant 0 : i32
    %c0_i32_0 = arith.constant 0 : i32
    return %arg1, %c0_i32 : i32, i32
  }
  func.func @transform_2(%arg0: i32, %arg1: i32) -> (i32, i32) {
    %c0_i32 = arith.constant 0 : i32
    %c0_i32_0 = arith.constant 0 : i32
    return %c0_i32, %arg1 : i32, i32
  }
  func.func @transform_3(%arg0: i32, %arg1: i32) -> (i32, i32) {
    %c0_i32 = arith.constant 0 : i32
    return %arg0, %arg1 : i32, i32
  }
}

</mosaic_0001>

<bundles_post_ra>
// kernel: bi_multi_head_attention.6
= control target key start
LH: loop header
LB: loop body
LE: loop exit
PB: predicated region body
PF: predicated region fallthrough
CT: control target
= control target key end

     0   :  { %vm28_vm0 = vcmask 130048   ;;  %vm82_vm1 = vcmask 523264   ;;  %s185_s1 = inlined_call_operand.vmem [shape: f32[64,16], index: 1, kind: input, shape index: {}]   ;;  %s186_s2 = inlined_call_operand.vmem [shape: f32[1,64], index: 2, kind: input, shape index: {}]   ;;  %s187_s0 = inlined_call_operand.vmem [shape: f32[16,16], index: 0, kind: input, shape index: {}]   ;;  %s188_s3 = inlined_call_operand.vmem [shape: f32[16,64], index: 3, kind: output, shape index: {}]  }
   0x1   :  { %v23_v0 = vld [vmem:[%s185_s1 + $0x38] sm:$0xff]  ;;  %v22_v1 = vld [vmem:[%s185_s1 + $0x30] sm:$0xff]  ;;  %v21_v2 = vld [vmem:[%s185_s1 + $0x28] sm:$0xff] }
   0x2   :  { %89 = vmatpush.xpose.msk.msra.mxu0 %vm28_vm0, %v23_v0  ;;  %99 = vmatpush.xpose.msk.msra.mxu1 %vm28_vm0, %v23_v0  ;;  %v20_v3 = vld [vmem:[%s185_s1 + $0x20] sm:$0xff]  ;;  %v19_v4 = vld [vmem:[%s185_s1 + $0x18] sm:$0xff]  ;;  %v18_v5 = vld [vmem:[%s185_s1 + $0x10] sm:$0xff] }
   0x3   :  { %v17_v6 = vld [vmem:[%s185_s1 + $0x8] sm:$0xff]  ;;  %v16_v7 = vld [vmem:[%s185_s1] sm:$0xff] }
   0x4   :  { %v14_v8 = vld [vmem:[%s187_s0] sm:$0xff]  ;;  %v15_v9 = vld [vmem:[%s187_s0 + $0x8] sm:$0xff] }
   0x5   :  { %v107_v10 = vld [vmem:[%s186_s2] ss:$0 sm:$0xff] }
   0x6   :  { %90 = vmatpush.xpose.msk.msra.mxu0 %vm28_vm0, %v22_v1  ;;  %100 = vmatpush.xpose.msk.msra.mxu1 %vm28_vm0, %v22_v1 }
   0xa   :  { %91 = vmatpush.xpose.msk.msra.mxu0 %vm28_vm0, %v21_v2  ;;  %101 = vmatpush.xpose.msk.msra.mxu1 %vm28_vm0, %v21_v2 }
   0xe   :  { %92 = vmatpush.xpose.msk.msra.mxu0 %vm28_vm0, %v20_v3  ;;  %102 = vmatpush.xpose.msk.msra.mxu1 %vm28_vm0, %v20_v3 }
  0x12   :  { %93 = vmatpush.xpose.msk.msra.mxu0 %vm28_vm0, %v19_v4  ;;  %103 = vmatpush.xpose.msk.msra.mxu1 %vm28_vm0, %v19_v4 }
  0x16   :  { %94 = vmatpush.xpose.msk.msra.mxu0 %vm28_vm0, %v18_v5  ;;  %104 = vmatpush.xpose.msk.msra.mxu1 %vm28_vm0, %v18_v5 }
  0x1a   :  { %95 = vmatpush.xpose.msk.msra.mxu0 %vm28_vm0, %v17_v6  ;;  %105 = vmatpush.xpose.msk.msra.mxu1 %vm28_vm0, %v17_v6 }
  0x1e   :  { %96 = vmatpush.xpose.msk.msra.mxu0 %vm28_vm0, %v16_v7  ;;  %106 = vmatpush.xpose.msk.msra.mxu1 %vm28_vm0, %v16_v7 }
  0x21   :  { %97 = vmatmul.msk.f32.vlgmr.msra.gmra.mxu0 %vm28_vm0, %v14_v8  ;;  %98 = vmatmul.msk.f32.vlgmr.msra.gmra.mxu1 %vm28_vm0, %v15_v9 }
  0x9e   :  { %v76_v11 = vpop.f32.mrf.mxu0  ;;  %v79_v12 = vpop.f32.mrf.mxu1 }
  0x9f   :  { %v77_v13 = vadd.f32 %v107_v10, %v76_v11  ;;  %v80_v14 = vadd.f32 %v107_v10, %v79_v12 }
  0xa1   :  { %83 = vst.msk [vmem:[%s188_s3] sm:$0xff] %vm82_vm1, %v77_v13 }
  0xa2   :  { %84 = vst.msk [vmem:[%s188_s3 + $0x8] sm:$0xff] %vm82_vm1, %v80_v14 }

// kernel: bi_multi_head_attention.5
= control target key start
LH: loop header
LB: loop body
LE: loop exit
PB: predicated region body
PF: predicated region fallthrough
CT: control target
= control target key end

     0   :  { %vm30_vm0 = vcmask 261120   ;;  %vm96_vm1 = vcmask 523264   ;;  %s249_s1 = inlined_call_operand.vmem [shape: f32[64,32], index: 1, kind: input, shape index: {}]   ;;  %s250_s2 = inlined_call_operand.vmem [shape: f32[1,64], index: 2, kind: input, shape index: {}]   ;;  %s251_s0 = inlined_call_operand.vmem [shape: f32[32,32], index: 0, kind: input, shape index: {}]   ;;  %s252_s3 = inlined_call_operand.vmem [shape: f32[32,64], index: 3, kind: output, shape index: {}]  }
   0x1   :  { %v25_v0 = vld [vmem:[%s249_s1 + $0x38] sm:$0xff]  ;;  %v24_v1 = vld [vmem:[%s249_s1 + $0x30] sm:$0xff]  ;;  %v23_v2 = vld [vmem:[%s249_s1 + $0x28] sm:$0xff] }
   0x2   :  { %118 = vmatpush.xpose.msk.msra.mxu2 %vm30_vm0, %v25_v0  ;;  %119 = vmatpush.xpose.msk.msra.mxu3 %vm30_vm0, %v25_v0  ;;  %v22_v3 = vld [vmem:[%s249_s1 + $0x20] sm:$0xff]  ;;  %v21_v4 = vld [vmem:[%s249_s1 + $0x18] sm:$0xff]  ;;  %v20_v5 = vld [vmem:[%s249_s1 + $0x10] sm:$0xff] }
   0x3   :  { %105 = vmatpush.xpose.msk.msra.mxu0 %vm30_vm0, %v25_v0  ;;  %117 = vmatpush.xpose.msk.msra.mxu1 %vm30_vm0, %v25_v0  ;;  %v19_v6 = vld [vmem:[%s249_s1 + $0x8] sm:$0xff]  ;;  %v18_v7 = vld [vmem:[%s249_s1] sm:$0xff]  ;;  %v16_v8 = vld [vmem:[%s251_s0 + $0x10] sm:$0xff] }
   0x4   :  { %v17_v9 = vld [vmem:[%s251_s0 + $0x18] sm:$0xff]  ;;  %v14_v10 = vld [vmem:[%s251_s0] sm:$0xff]  ;;  %v15_v11 = vld [vmem:[%s251_s0 + $0x8] sm:$0xff] }
   0x5   :  { %v141_v12 = vld [vmem:[%s250_s2] ss:$0 sm:$0xff] }
   0x6   :  { %121 = vmatpush.xpose.msk.msra.mxu2 %vm30_vm0, %v24_v1  ;;  %122 = vmatpush.xpose.msk.msra.mxu3 %vm30_vm0, %v24_v1 }
   0x7   :  { %106 = vmatpush.xpose.msk.msra.mxu0 %vm30_vm0, %v24_v1  ;;  %120 = vmatpush.xpose.msk.msra.mxu1 %vm30_vm0, %v24_v1 }
   0xa   :  { %124 = vmatpush.xpose.msk.msra.mxu2 %vm30_vm0, %v23_v2  ;;  %125 = vmatpush.xpose.msk.msra.mxu3 %vm30_vm0, %v23_v2 }
   0xb   :  { %107 = vmatpush.xpose.msk.msra.mxu0 %vm30_vm0, %v23_v2  ;;  %123 = vmatpush.xpose.msk.msra.mxu1 %vm30_vm0, %v23_v2 }
   0xe   :  { %127 = vmatpush.xpose.msk.msra.mxu2 %vm30_vm0, %v22_v3  ;;  %128 = vmatpush.xpose.msk.msra.mxu3 %vm30_vm0, %v22_v3 }
   0xf   :  { %108 = vmatpush.xpose.msk.msra.mxu0 %vm30_vm0, %v22_v3  ;;  %126 = vmatpush.xpose.msk.msra.mxu1 %vm30_vm0, %v22_v3 }
  0x12   :  { %130 = vmatpush.xpose.msk.msra.mxu2 %vm30_vm0, %v21_v4  ;;  %131 = vmatpush.xpose.msk.msra.mxu3 %vm30_vm0, %v21_v4 }
  0x13   :  { %109 = vmatpush.xpose.msk.msra.mxu0 %vm30_vm0, %v21_v4  ;;  %129 = vmatpush.xpose.msk.msra.mxu1 %vm30_vm0, %v21_v4 }
  0x16   :  { %133 = vmatpush.xpose.msk.msra.mxu2 %vm30_vm0, %v20_v5  ;;  %134 = vmatpush.xpose.msk.msra.mxu3 %vm30_vm0, %v20_v5 }
  0x17   :  { %110 = vmatpush.xpose.msk.msra.mxu0 %vm30_vm0, %v20_v5  ;;  %132 = vmatpush.xpose.msk.msra.mxu1 %vm30_vm0, %v20_v5 }
  0x1a   :  { %136 = vmatpush.xpose.msk.msra.mxu2 %vm30_vm0, %v19_v6  ;;  %137 = vmatpush.xpose.msk.msra.mxu3 %vm30_vm0, %v19_v6 }
  0x1b   :  { %111 = vmatpush.xpose.msk.msra.mxu0 %vm30_vm0, %v19_v6  ;;  %135 = vmatpush.xpose.msk.msra.mxu1 %vm30_vm0, %v19_v6 }
  0x1e   :  { %139 = vmatpush.xpose.msk.msra.mxu2 %vm30_vm0, %v18_v7  ;;  %140 = vmatpush.xpose.msk.msra.mxu3 %vm30_vm0, %v18_v7 }
  0x1f   :  { %112 = vmatpush.xpose.msk.msra.mxu0 %vm30_vm0, %v18_v7  ;;  %138 = vmatpush.xpose.msk.msra.mxu1 %vm30_vm0, %v18_v7 }
  0x21   :  { %115 = vmatmul.msk.f32.vlgmr.msra.gmra.mxu2 %vm30_vm0, %v16_v8  ;;  %116 = vmatmul.msk.f32.vlgmr.msra.gmra.mxu3 %vm30_vm0, %v17_v9 }
  0x22   :  { %113 = vmatmul.msk.f32.vlgmr.msra.gmra.mxu0 %vm30_vm0, %v14_v10  ;;  %114 = vmatmul.msk.f32.vlgmr.msra.gmra.mxu1 %vm30_vm0, %v15_v11 }
  0x9f   :  { %v84_v13 = vpop.f32.mrf.mxu0  ;;  %v87_v14 = vpop.f32.mrf.mxu1 }
  0xa0   :  { %v85_v15 = vadd.f32 %v141_v12, %v84_v13  ;;  %v88_v16 = vadd.f32 %v141_v12, %v87_v14 }
  0xa2   :  { %97 = vst.msk [vmem:[%s252_s3] sm:$0xff] %vm96_vm1, %v85_v15 }
  0xa3   :  { %98 = vst.msk [vmem:[%s252_s3 + $0x8] sm:$0xff] %vm96_vm1, %v88_v16 }
  0xa4   :  { %v90_v17 = vpop.f32.mrf.mxu2  ;;  %v93_v18 = vpop.f32.mrf.mxu3 }
  0xa5   :  { %v91_v19 = vadd.f32 %v141_v12, %v90_v17  ;;  %v94_v20 = vadd.f32 %v141_v12, %v93_v18 }
  0xa7   :  { %99 = vst.msk [vmem:[%s252_s3 + $0x10] sm:$0xff] %vm96_vm1, %v91_v19 }
  0xa8   :  { %100 = vst.msk [vmem:[%s252_s3 + $0x18] sm:$0xff] %vm96_vm1, %v94_v20 }

// kernel: bi_multi_head_attention.8
= control target key start
LH: loop header
LB: loop body
LE: loop exit
PB: predicated region body
PF: predicated region fallthrough
CT: control target
= control target key end

     0   :  { %vm27_vm0 = vcmask 261120   ;;  %s230_s0 = inlined_call_operand.vmem [shape: f32[32,32], index: 0, kind: input, shape index: {}]   ;;  %s231_s1 = inlined_call_operand.vmem [shape: f32[32,32], index: 1, kind: input, shape index: {}]   ;;  %s232_s2 = inlined_call_operand.vmem [shape: f32[1,32], index: 2, kind: input, shape index: {}]   ;;  %s233_s3 = inlined_call_operand.hbm [shape: f32[32,32], index: 3, kind: output, shape index: {}]  }
   0x1   :  { %v22_v0 = vld [vmem:[%s231_s1 + $0x18] sm:$0xff]  ;;  %v21_v1 = vld [vmem:[%s231_s1 + $0x10] sm:$0xff] }
   0x2   :  { %112 = vmatpush.xpose.msk.msra.mxu2 %vm27_vm0, %v22_v0  ;;  %113 = vmatpush.xpose.msk.msra.mxu3 %vm27_vm0, %v22_v0 }
   0x3   :  { %103 = vmatpush.xpose.msk.msra.mxu0 %vm27_vm0, %v22_v0  ;;  %111 = vmatpush.xpose.msk.msra.mxu1 %vm27_vm0, %v22_v0 }
   0x4   :  { %8 = vsyncpa [#allocation3], 0  ;;  %v20_v2 = vld [vmem:[%s231_s1 + $0x8] sm:$0xff]  ;;  %v19_v3 = vld [vmem:[%s231_s1] sm:$0xff]  ;;  %s153_s29 = smov [#allocation2]   ;;  %s91_s5 = sshll.u32 %s233_s3, 4  ;;  %s92_s5 = int_to_ptr.hbm [resolvable:$true] %s91_s5 }
   0x5   :  { %v17_v4 = vld [vmem:[%s230_s0 + $0x10] sm:$0xff]  ;;  %v18_v5 = vld [vmem:[%s230_s0 + $0x18] sm:$0xff]  ;;  %v15_v6 = vld [vmem:[%s230_s0] sm:$0xff]  ;;  %s155_s6 = smov 8  }
   0x6   :  { %115 = vmatpush.xpose.msk.msra.mxu2 %vm27_vm0, %v21_v1  ;;  %116 = vmatpush.xpose.msk.msra.mxu3 %vm27_vm0, %v21_v1  ;;  %v16_v7 = vld [vmem:[%s230_s0 + $0x8] sm:$0xff]  ;;  %v126_v8 = vld [vmem:[%s232_s2] ss:$0 sm:$0xff]  ;;  %s89_s0 = sshll.u32 %s153_s29, 4  ;;  %s154_s2 = smov 128   ;;  %s90_s0 = int_to_ptr.vmem [resolvable:$true] %s89_s0 }
   0x7   :  { %104 = vmatpush.xpose.msk.msra.mxu0 %vm27_vm0, %v21_v1  ;;  %114 = vmatpush.xpose.msk.msra.mxu1 %vm27_vm0, %v21_v1 }
   0xa   :  { %118 = vmatpush.xpose.msk.msra.mxu2 %vm27_vm0, %v20_v2  ;;  %119 = vmatpush.xpose.msk.msra.mxu3 %vm27_vm0, %v20_v2 }
   0xb   :  { %105 = vmatpush.xpose.msk.msra.mxu0 %vm27_vm0, %v20_v2  ;;  %117 = vmatpush.xpose.msk.msra.mxu1 %vm27_vm0, %v20_v2 }
   0xe   :  { %121 = vmatpush.xpose.msk.msra.mxu2 %vm27_vm0, %v19_v3  ;;  %122 = vmatpush.xpose.msk.msra.mxu3 %vm27_vm0, %v19_v3 }
   0xf   :  { %106 = vmatpush.xpose.msk.msra.mxu0 %vm27_vm0, %v19_v3  ;;  %120 = vmatpush.xpose.msk.msra.mxu1 %vm27_vm0, %v19_v3 }
  0x11   :  { %109 = vmatmul.msk.f32.vlgmr.msra.gmra.mxu2 %vm27_vm0, %v17_v4  ;;  %110 = vmatmul.msk.f32.vlgmr.msra.gmra.mxu3 %vm27_vm0, %v18_v5 }
  0x12   :  { %107 = vmatmul.msk.f32.vlgmr.msra.gmra.mxu0 %vm27_vm0, %v15_v6  ;;  %108 = vmatmul.msk.f32.vlgmr.msra.gmra.mxu1 %vm27_vm0, %v16_v7 }
  0x8f   :  { %v69_v9 = vpop.f32.mrf.mxu0  ;;  %v72_v10 = vpop.f32.mrf.mxu1 }
  0x90   :  { %v70_v11 = vadd.f32 %v126_v8, %v69_v9  ;;  %v73_v12 = vadd.f32 %v126_v8, %v72_v10 }
  0x92   :  { %81 = vst.msk [vmem:[#allocation2] sm:$0xff] %vm27_vm0, %v70_v11 }
  0x93   :  { %82 = vst.msk [vmem:[#allocation2 + $0x8] sm:$0xff] %vm27_vm0, %v73_v12 }
  0x94   :  { %v75_v13 = vpop.f32.mrf.mxu2  ;;  %v78_v14 = vpop.f32.mrf.mxu3 }
  0x95   :  { %v76_v15 = vadd.f32 %v126_v8, %v75_v13  ;;  %v79_v16 = vadd.f32 %v126_v8, %v78_v14 }
  0x97   :  { %83 = vst.msk [vmem:[#allocation2 + $0x10] sm:$0xff] %vm27_vm0, %v76_v15 }
  0x98   :  { %84 = vst.msk [vmem:[#allocation2 + $0x18] sm:$0xff] %vm27_vm0, %v79_v16 }
  0x99   :  { %97 = dma.vmem_to_hbm [thread:$0]  %s90_s0, 512, %s92_s5, [#allocation3], %s154_s2, %s154_s2, %s155_s6  }
  0x9a   :  { %151 = dma.done.wait [#allocation3], 512  }
  0x9b   :  { %152 = vsyncadd [#allocation3], 4294966784 }
  0x9c   :  { %102 = vsyncpa [#allocation3], 1 }

// kernel: bi_multi_head_attention.9
= control target key start
LH: loop header
LB: loop body
LE: loop exit
PB: predicated region body
PF: predicated region fallthrough
CT: control target
= control target key end

     0   :  { %vm23_vm0 = vcmask 261120   ;;  %s157_s0 = inlined_call_operand.vmem [shape: f32[16,32], index: 0, kind: input, shape index: {}]   ;;  %s158_s1 = inlined_call_operand.vmem [shape: f32[16,32], index: 1, kind: input, shape index: {}]   ;;  %s159_s2 = inlined_call_operand.vmem [shape: f32[1,16], index: 2, kind: input, shape index: {}]   ;;  %s160_s3 = inlined_call_operand.hbm [shape: f32[16,16], index: 3, kind: output, shape index: {}]  }
   0x1   :  { %v18_v0 = vld [vmem:[%s158_s1 + $0x8] sm:$0xff]  ;;  %v17_v1 = vld [vmem:[%s158_s1] sm:$0xff] }
   0x2   :  { %80 = vmatpush.xpose.msk.msra.mxu0 %vm23_vm0, %v18_v0  ;;  %84 = vmatpush.xpose.msk.msra.mxu1 %vm23_vm0, %v18_v0 }
   0x3   :  { %8 = vsyncpa [#allocation3], 0  ;;  %v15_v2 = vld [vmem:[%s157_s0] sm:$0xff]  ;;  %v16_v3 = vld [vmem:[%s157_s0 + $0x8] sm:$0xff]  ;;  %s116_s22 = smov [#allocation2]   ;;  %s68_s25 = sshll.u32 %s160_s3, 4  ;;  %s69_s25 = int_to_ptr.hbm [resolvable:$true] %s68_s25 }
   0x4   :  { %v89_v4 = vld [vmem:[%s159_s2] ss:$0 sm:$0xff]  ;;  %s66_s23 = sshll.u32 %s116_s22, 4  ;;  %vm59_vm1 = vcmask 130048   ;;  %s117_s0 = smov 128   ;;  %s67_s23 = int_to_ptr.vmem [resolvable:$true] %s66_s23 }
   0x5   :  { %s118_s26 = smov 8  }
   0x6   :  { %81 = vmatpush.xpose.msk.msra.mxu0 %vm23_vm0, %v17_v1  ;;  %85 = vmatpush.xpose.msk.msra.mxu1 %vm23_vm0, %v17_v1 }
   0x9   :  { %82 = vmatmul.msk.f32.vlgmr.msra.gmra.mxu0 %vm23_vm0, %v15_v2  ;;  %83 = vmatmul.msk.f32.vlgmr.msra.gmra.mxu1 %vm23_vm0, %v16_v3 }
  0x86   :  { %v53_v5 = vpop.f32.mrf.mxu0  ;;  %v56_v6 = vpop.f32.mrf.mxu1 }
  0x87   :  { %v54_v7 = vadd.f32 %v89_v4, %v53_v5  ;;  %v57_v8 = vadd.f32 %v89_v4, %v56_v6 }
  0x89   :  { %60 = vst.msk [vmem:[#allocation2] sm:$0xff] %vm59_vm1, %v54_v7 }
  0x8a   :  { %61 = vst.msk [vmem:[#allocation2 + $0x8] sm:$0xff] %vm59_vm1, %v57_v8 }
  0x8b   :  { %74 = dma.vmem_to_hbm [thread:$0]  %s67_s23, 256, %s69_s25, [#allocation3], %s117_s0, %s117_s0, %s118_s26  }
  0x8c   :  { %114 = dma.done.wait [#allocation3], 256  }
  0x8d   :  { %115 = vsyncadd [#allocation3], 4294967040 }
  0x8e   :  { %79 = vsyncpa [#allocation3], 1 }

// kernel: bi_multi_head_attention.7
= control target key start
LH: loop header
LB: loop body
LE: loop exit
PB: predicated region body
PF: predicated region fallthrough
CT: control target
= control target key end

     0   :  { %s1333_s18 = smov 0   ;;  %s1508_s0 = inlined_call_operand.vmem [shape: f32[8,16,8], index: 0, kind: input, shape index: {}]   ;;  %s1509_s1 = inlined_call_operand.vmem [shape: f32[8,8,8], index: 1, kind: input, shape index: {}]   ;;  %s1510_s2 = inlined_call_operand.vmem [shape: f32[8,16,8], index: 2, kind: input, shape index: {}]   ;;  %s1511_s3 = inlined_call_operand.vmem [shape: f32[8,8,8], index: 3, kind: input, shape index: {}]   ;;  %s1512_s4 = inlined_call_operand.vmem [shape: f32[8,16,8], index: 4, kind: output, shape index: {0}]   ;;  %s1513_s5 = inlined_call_operand.vmem [shape: f32[8,8,8], index: 5, kind: output, shape index: {1}]  }
   0x1 LB: > { %s1170_s19 = sadd.s32 4294967295, %s1301_s18   ;;  %p1174_p0 = scmp.ge.s32.totalorder %s1301_s18, 1  ;;  %s1301_s18 = sphi %s1333_s18, %s16_s18  }
   0x2   : > { %p226_p1 = scmp.lt.s32.totalorder %s1301_s18, 3 }
   0x4   : > { %p227_p2 = pnand %p1174_p0, %p226_p1 }
   0x5   : > { %s1175_s20 = sshll.u32 (!%p227_p2), %s1170_s19, 2 }
   0x6   : > { %230 = sbr.rel (%p227_p2) target bundleno = 540 (0x21c), region = 36  ;;  %p278_p3 = scmp.lt.s32.totalorder (!%p227_p2), %s1175_s20, 7 }
   0xb   : > { %s1515_s20 = smov (!%p278_p3, %s1175_s20), 7  ;;  %vm340_vm0 = vcmask 64512   ;;  %vm817_vm1 = vcmask 130048  }
   0xc   : > { %s1341_s21 = sshll.u32 %s1515_s20, 4  ;;  %s1343_s22 = sshll.u32 %s1515_s20, 3 }
   0xd   : > { %s282_s25 = scalar_lea.vmem %s1508_s0, %s1341_s21  ;;  %s288_s28 = scalar_lea.vmem %s1509_s1, %s1343_s22 }
   0xe   : > { %v324_v0 = vld [vmem:[%s288_s28] sm:$0xff]  ;;  %v325_v1 = vld [vmem:[%s288_s28 + $0x8] sm:$0xff]  ;;  %v326_v2 = vld [vmem:[%s288_s28 + $0x10] sm:$0xff]  ;;  %s301_s6 = scalar_lea.vmem %s1511_s3, %s1343_s22  ;;  %s1448_s9 = scalar_lea.vmem %s1510_s2, %s1341_s21 }
   0xf   : > { %1190 = vmatpush.xpose.msk.msra.mxu0 %vm340_vm0, %v324_v0  ;;  %1193 = vmatpush.xpose.msk.msra.mxu1 %vm340_vm0, %v325_v1  ;;  %v327_v3 = vld [vmem:[%s288_s28 + $0x18] sm:$0xff]  ;;  %v316_v4 = vld [vmem:[%s282_s25] sm:$0xff]  ;;  %v318_v5 = vld [vmem:[%s282_s25 + $0x10] sm:$0xff]  ;;  %s1479_s12 = scalar_lea.vmem %s1512_s4, %s1341_s21  ;;  %s314_s15 = scalar_lea.vmem %s1513_s5, %s1343_s22 }
  0x10   : > { %1196 = vmatpush.xpose.msk.msra.mxu2 %vm340_vm0, %v326_v2  ;;  %1199 = vmatpush.xpose.msk.msra.mxu3 %vm340_vm0, %v327_v3  ;;  %v320_v6 = vld [vmem:[%s282_s25 + $0x20] sm:$0xff]  ;;  %v322_v7 = vld [vmem:[%s282_s25 + $0x30] sm:$0xff]  ;;  %v317_v8 = vld [vmem:[%s282_s25 + $0x8] sm:$0xff] }
  0x11   : > { %v319_v9 = vld [vmem:[%s282_s25 + $0x18] sm:$0xff]  ;;  %v321_v10 = vld [vmem:[%s282_s25 + $0x28] sm:$0xff] }
  0x12   : > { %1191 = vmatmul.msk.f32.vlgmr.msra.gmra.mxu0 %vm340_vm0, %v316_v4  ;;  %1194 = vmatmul.msk.f32.vlgmr.msra.gmra.mxu1 %vm340_vm0, %v318_v5  ;;  %v323_v11 = vld [vmem:[%s282_s25 + $0x38] sm:$0xff] }
  0x13   : > { %1197 = vmatmul.msk.f32.vlgmr.msra.gmra.mxu2 %vm340_vm0, %v320_v6  ;;  %1200 = vmatmul.msk.f32.vlgmr.msra.gmra.mxu3 %vm340_vm0, %v322_v7 }
  0x1a   : > { %1192 = vmatmul.msk.f32.gmra.mxu0 %vm340_vm0, %v317_v8  ;;  %1195 = vmatmul.msk.f32.gmra.mxu1 %vm340_vm0, %v319_v9 }
  0x1b   : > { %1198 = vmatmul.msk.f32.gmra.mxu2 %vm340_vm0, %v321_v10  ;;  %1201 = vmatmul.msk.f32.gmra.mxu3 %vm340_vm0, %v323_v11 }
  0x8f   : > { %v367_v12 = vpop.f32.mrf.mxu0  ;;  %v399_v13 = vpop.f32.mrf.mxu1 }
  0x90   : > { %v1365_v14 = vclamps-f32 %v367_v12, 50000.0  ;;  %v1369_v16 = vclamps-f32 %v399_v13, 50000.0 }
  0x92   : > { %v485_v15 = vsel %vm340_vm0, %v1365_v14, -inf  ;;  %v491_v24 = vsel %vm340_vm0, %v1369_v16, -inf }
  0x93   : > { %486 = vmax.xlane.f32.xlu1 %v485_v15 }
  0x96   : > { %v431_v17 = vpop.f32.mrf.mxu2  ;;  %v463_v18 = vpop.f32.mrf.mxu3 }
  0x97   : > { %v1371_v19 = vclamps-f32 %v431_v17, 50000.0  ;;  %v370_v20 = vpop.f32.mrf.mxu0  ;;  %v402_v21 = vpop.f32.mrf.mxu1  ;;  %v1381_v26 = vclamps-f32 %v463_v18, 50000.0 }
  0x98   : > { %v1373_v22 = vclamps-f32 %v370_v20, 50000.0  ;;  %v1375_v23 = vclamps-f32 %v402_v21, 50000.0 }
  0x99   : > { %v497_v25 = vsel %vm340_vm0, %v1371_v19, -inf  ;;  %v503_v35 = vsel %vm340_vm0, %v1381_v26, -inf }
  0x9a   : > { %498 = vmax.xlane.f32.xlu0 %v497_v25  ;;  %v494_v27 = vsel %vm340_vm0, %v1375_v23, -inf  ;;  %v488_v28 = vsel %vm340_vm0, %v1373_v22, -inf }
  0x9b   : > { %492 = vmax.xlane.f32.xlu1 %v491_v24  ;;  %v704_v29 = vmax.f32 %v491_v24, %v494_v27  ;;  %v697_v30 = vmax.f32 %v485_v15, %v488_v28 }
  0x9d   : > { %v705_v31 = vrot.slane %v704_v29, 4  ;;  %v698_v32 = vrot.slane %v697_v30, 4 }
  0x9e   : > { %v434_v33 = vpop.f32.mrf.mxu2  ;;  %v466_v34 = vpop.f32.mrf.mxu3 }
  0x9f   : > { %v1389_v36 = vclamps-f32 %v434_v33, 50000.0  ;;  %v1391_v37 = vclamps-f32 %v466_v34, 50000.0  ;;  %v706_v38 = vmax.f32 %v704_v29, %v705_v31  ;;  %v699_v39 = vmax.f32 %v697_v30, %v698_v32 }
  0xa1   : > { %v500_v40 = vsel %vm340_vm0, %v1389_v36, -inf  ;;  %v707_v41 = vrot.slane %v706_v38, 2  ;;  %v506_v42 = vsel %vm340_vm0, %v1391_v37, -inf  ;;  %v700_v43 = vrot.slane %v699_v39, 2 }
  0xa2   : > { %504 = vmax.xlane.f32.xlu0 %v503_v35  ;;  %501 = vmax.xlane.f32.xlu2 %v500_v40  ;;  %v711_v44 = vmax.f32 %v497_v25, %v500_v40  ;;  %v718_v45 = vmax.f32 %v503_v35, %v506_v42 }
  0xa3   : > { %v708_v46 = vmax.f32 %v706_v38, %v707_v41  ;;  %495 = vmax.xlane.f32.xlu1 %v494_v27  ;;  %v701_v47 = vmax.f32 %v699_v39, %v700_v43 }
  0xa4   : > { %v712_v48 = vrot.slane %v711_v44, 4  ;;  %v719_v49 = vrot.slane %v718_v45, 4 }
  0xa5   : > { %v709_v50 = vrot.slane %v708_v46, 1  ;;  %v702_v51 = vrot.slane %v701_v47, 1 }
  0xa6   : > { %v713_v52 = vmax.f32 %v711_v44, %v712_v48  ;;  %v720_v53 = vmax.f32 %v718_v45, %v719_v49  ;;  %v336_v44 = vld [vmem:[%s301_s6] sm:$0xff]  ;;  %v338_v45 = vld [vmem:[%s301_s6 + $0x10] sm:$0xff] }
  0xa7   : > { %v710_v54 = vmax.f32 %v708_v46, %v709_v50  ;;  %v703_v55 = vmax.f32 %v701_v47, %v702_v51  ;;  %578 = vmatpush.msrb.mxu0 %v336_v44  ;;  %636 = vmatpush.msrb.mxu2 %v338_v45  ;;  %v337_v46 = vld [vmem:[%s301_s6 + $0x8] sm:$0xff]  ;;  %v339_v47 = vld [vmem:[%s301_s6 + $0x18] sm:$0xff] }
  0xa8   : > { %v714_v56 = vrot.slane %v713_v52, 2  ;;  %v721_v57 = vrot.slane %v720_v53, 2  ;;  %607 = vmatpush.msrb.mxu1 %v337_v46  ;;  %665 = vmatpush.msrb.mxu3 %v339_v47  ;;  %v335_v47 = vld [vmem:[%s1448_s9 + $0x38] sm:$0xff] }
  0xa9   : > { %v728_v58 = vsub.f32 %v1375_v23, %v710_v54  ;;  %v726_v59 = vsub.f32 %v1373_v22, %v703_v55  ;;  %v727_v60 = vsub.f32 %v1369_v16, %v710_v54  ;;  %v725_v61 = vsub.f32 %v1365_v14, %v703_v55 }
  0xaa   : > { %v715_v62 = vmax.f32 %v713_v52, %v714_v56  ;;  %v722_v63 = vmax.f32 %v720_v53, %v721_v57  ;;  %507 = vmax.xlane.f32.xlu2 %v506_v42  ;;  %489 = vmax.xlane.f32.xlu0 %v488_v28 }
  0xab   : > { %v739_v0 = vmul.f32 1.442695, %v728_v58  ;;  %v735_v1 = vmul.f32 1.442695, %v726_v59  ;;  %v737_v2 = vmul.f32 1.442695, %v727_v60  ;;  %1000 = vmatpush.msra.mxu3 %v335_v47 }
  0xac   : > { %v716_v3 = vrot.slane %v715_v62, 1  ;;  %v723_v4 = vrot.slane %v722_v63, 1  ;;  %v733_v5 = vmul.f32 1.442695, %v725_v61 }
  0xad   : > { %1239 = vpow2.f32 %v739_v0 }
  0xae   : > { %v717_v6 = vmax.f32 %v715_v62, %v716_v3  ;;  %v724_v7 = vmax.f32 %v722_v63, %v723_v4  ;;  %1241 = vpow2.f32 %v735_v1 }
  0xaf   : > { %1243 = vpow2.f32 %v737_v2 }
  0xb0   : > { %v730_v8 = vsub.f32 %v1389_v36, %v717_v6  ;;  %v732_v9 = vsub.f32 %v1391_v37, %v724_v7  ;;  %v731_v10 = vsub.f32 %v1381_v26, %v724_v7  ;;  %1245 = vpow2.f32 %v733_v5 }
  0xb1   : > { %v729_v11 = vsub.f32 %v1371_v19, %v717_v6 }
  0xb2   : > { %v743_v12 = vmul.f32 1.442695, %v730_v8  ;;  %v747_v13 = vmul.f32 1.442695, %v732_v9  ;;  %v745_v15 = vmul.f32 1.442695, %v731_v10 }
  0xb3   : > { %v1240_v17 = vpop.eup %1239  ;;  %v741_v18 = vmul.f32 1.442695, %v729_v11  ;;  %v330_v10 = vld [vmem:[%s1448_s9 + $0x10] sm:$0xff] }
  0xb4   : > { %v1242_v20 = vpop.eup %1241  ;;  %1247 = vpow2.f32 %v743_v12  ;;  %v759_v21 = vsel %vm340_vm0, %v1240_v17, 0.0 }
  0xb5   : > { %v1244_v24 = vpop.eup %1243  ;;  %1249 = vpow2.f32 %v747_v13  ;;  %v750_v25 = vsel %vm340_vm0, %v1242_v20, 0.0 }
  0xb6   : > { %v1246_v27 = vpop.eup %1245  ;;  %v758_v28 = vsel %vm340_vm0, %v1244_v24, 0.0  ;;  %1251 = vpow2.f32 %v745_v15 }
  0xb7   : > { %v1408_v29 = vadd.f32 %v759_v21, %v758_v28  ;;  %v749_v30 = vsel %vm340_vm0, %v1246_v27, 0.0  ;;  %1253 = vpow2.f32 %v741_v18 }
  0xb8   : > { %v1411_v31 = vadd.f32 %v750_v25, %v749_v30  ;;  %v333_v25 = vld [vmem:[%s1448_s9 + $0x28] sm:$0xff] }
  0xb9   : > { %945 = vmatpush.msra.mxu2 %v333_v25 }
  0xba   : > { %v1248_v32 = vpop.eup %1247  ;;  %v752_v18 = vrot.slane %v1411_v31, 4 }
  0xbb   : > { %v1250_v33 = vpop.eup %1249  ;;  %v768_v35 = vsel %vm340_vm0, %v1248_v32, 0.0 }
  0xbc   : > { %v1252_v34 = vpop.eup %1251  ;;  %v777_v38 = vsel %vm340_vm0, %v1250_v33, 0.0  ;;  %v753_v28 = vadd.f32 %v752_v18, %v1411_v31 }
  0xbd   : > { %v1254_v39 = vpop.eup %1253  ;;  %v776_v40 = vsel %vm340_vm0, %v1252_v34, 0.0 }
  0xbe   : > { %v1416_v41 = vadd.f32 %v777_v38, %v776_v40  ;;  %v767_v42 = vsel %vm340_vm0, %v1254_v39, 0.0  ;;  %v329_v40 = vld [vmem:[%s1448_s9 + $0x8] sm:$0xff] }
  0xbf   : > { %v1419_v43 = vadd.f32 %v768_v35, %v767_v42  ;;  %v328_v42 = vld [vmem:[%s1448_s9] sm:$0xff]  ;;  %835 = vmatpush.msra.mxu0 %v329_v40 }
  0xc1   : > { %v770_v30 = vrot.slane %v1419_v43, 4  ;;  %836 = vmatpush.msra.mxu0 %v328_v42 }
  0xd3   : > { %841 = vxpose.xlu2.b32.start [1/2] (short) (narrow) %v1244_v24, 8  ;;  %951 = vxpose.xlu0.b32.start [1/2] (short) (narrow) %v1252_v34, 8 }
  0xdb   : > { %842 = vxpose.xlu2.b32.end [2/2] (short) (narrow) %v1240_v17, 8  ;;  %952 = vxpose.xlu0.b32.end [2/2] (short) (narrow) %v1250_v33, 8  ;;  %v761_v17 = vrot.slane %v1408_v29, 4  ;;  %v754_v33 = vrot.slane %v753_v28, 2 }
  0xdd   : > { %785 = vxpose.xlu1.b32.start [1/2] (short) (narrow) %v1246_v27, 8  ;;  %v332_v27 = vld [vmem:[%s1448_s9 + $0x20] sm:$0xff] }
  0xde   : > { %946 = vmatpush.msra.mxu2 %v332_v27 }
  0xe3   : > { %896 = vxpose.xlu2.b32.start [1/2] (short) (narrow) %v1254_v39, 8  ;;  %v755_v39 = vadd.f32 %v754_v33, %v753_v28 }
  0xe5   : > { %786 = vxpose.xlu1.b32.end [2/2] (short) (narrow) %v1242_v20, 8  ;;  %v762_v20 = vadd.f32 %v761_v17, %v1408_v29  ;;  %v771_v29 = vadd.f32 %v770_v30, %v1419_v43  ;;  %v756_v45 = vrot.slane %v755_v39, 1 }
  0xe7   : > { %v772_v31 = vrot.slane %v771_v29, 2 }
  0xe9   : > { %v773_v46 = vadd.f32 %v772_v31, %v771_v29 }
  0xeb   : > { %897 = vxpose.xlu2.b32.end [2/2] (short) (narrow) %v1248_v32, 8  ;;  %v763_v32 = vrot.slane %v762_v20, 2 }
  0xed   : > { %v764_v38 = vadd.f32 %v763_v32, %v762_v20 }
  0xef   : > { %v765_v44 = vrot.slane %v764_v38, 1 }
  0xf1   : > { %v766_v43 = vadd.f32 %v765_v44, %v764_v38 }
 0x106   : > { %v487_v48 = vpop.xlane.xlu1 %486 }
 0x107   : > { %v509_v49 = vsub.f32 %v1365_v14, %v487_v48  ;;  %v334_v48 = vld [vmem:[%s1448_s9 + $0x30] sm:$0xff] }
 0x108   : > { %1001 = vmatpush.msra.mxu3 %v334_v48 }
 0x109   : > { %v517_v50 = vmul.f32 1.442695, %v509_v49  ;;  %v757_v49 = vadd.f32 %v756_v45, %v755_v39 }
 0x10b   : > { %1255 = vpow2.f32 %v517_v50  ;;  %v774_v50 = vrot.slane %v773_v46, 1 }
 0x10d   : > { %v499_v51 = vpop.xlane.xlu0 %498 }
 0x10e   : > { %v513_v52 = vsub.f32 %v1371_v19, %v499_v51  ;;  %v493_v53 = vpop.xlane.xlu1 %492  ;;  %v775_v51 = vadd.f32 %v774_v50, %v773_v46 }
 0x10f   : > { %v511_v54 = vsub.f32 %v1369_v16, %v493_v53 }
 0x110   : > { %v525_v55 = vmul.f32 1.442695, %v513_v52 }
 0x111   : > { %v1256_v56 = vpop.eup %1255  ;;  %v521_v57 = vmul.f32 1.442695, %v511_v54 }
 0x112   : > { %1257 = vpow2.f32 %v525_v55  ;;  %1210 = vmatmul.msk.f32.vlgmr.msrb.gmra.mxu0 %vm340_vm0, %v1256_v56  ;;  %v533_v13 = vsel %vm340_vm0, %v1256_v56, 0.0 }
 0x113   : > { %1259 = vpow2.f32 %v521_v57 }
 0x115   : > { %v505_v58 = vpop.xlane.xlu0 %504  ;;  %v502_v59 = vpop.xlane.xlu2 %501 }
 0x116   : > { %v515_v60 = vsub.f32 %v1381_v26, %v505_v58  ;;  %v514_v14 = vsub.f32 %v1389_v36, %v502_v59  ;;  %v496_v61 = vpop.xlane.xlu1 %495  ;;  %v779_v59 = vrot.slane %v1416_v41, 4 }
 0x117   : > { %v512_v62 = vsub.f32 %v1375_v23, %v496_v61 }
 0x118   : > { %v1258_v19 = vpop.eup %1257  ;;  %v529_v63 = vmul.f32 1.442695, %v515_v60  ;;  %v527_v0 = vmul.f32 1.442695, %v514_v14  ;;  %v780_v60 = vadd.f32 %v779_v59, %v1416_v41 }
 0x119   : > { %v1260_v16 = vpop.eup %1259  ;;  %v523_v1 = vmul.f32 1.442695, %v512_v62  ;;  %1214 = vmatmul.msk.f32.vlgmr.msrb.gmra.mxu2 %vm340_vm0, %v1258_v19  ;;  %v545_v15 = vsel %vm340_vm0, %v1258_v19, 0.0 }
 0x11a   : > { %1261 = vpow2.f32 %v529_v63  ;;  %1212 = vmatmul.msk.f32.vlgmr.msrb.gmra.mxu1 %vm340_vm0, %v1260_v16  ;;  %v539_v12 = vsel %vm340_vm0, %v1260_v16, 0.0  ;;  %v781_v61 = vrot.slane %v780_v60, 2 }
 0x11b   : > { %1263 = vpow2.f32 %v527_v0 }
 0x11c   : > { %1265 = vpow2.f32 %v523_v1  ;;  %v782_v62 = vadd.f32 %v781_v61, %v780_v60 }
 0x11d   : > { %v508_v2 = vpop.xlane.xlu2 %507  ;;  %v490_v3 = vpop.xlane.xlu0 %489 }
 0x11e   : > { %v516_v26 = vsub.f32 %v1391_v37, %v508_v2  ;;  %v510_v36 = vsub.f32 %v1373_v22, %v490_v3  ;;  %v1010_v22 = vlaneseq  ;;  %v331_v37 = vld [vmem:[%s1448_s9 + $0x18] sm:$0xff]  ;;  %v783_v19 = vrot.slane %v782_v62, 1 }
 0x11f   : > { %890 = vmatpush.msra.mxu1 %v331_v37 }
 0x120   : > { %v1262_v23 = vpop.eup %1261  ;;  %v531_v4 = vmul.f32 1.442695, %v516_v26  ;;  %v519_v5 = vmul.f32 1.442695, %v510_v36  ;;  %v1011_v11 = vshrl.u32 %v1010_v22, 7  ;;  %v784_v63 = vadd.f32 %v783_v19, %v782_v62 }
 0x121   : > { %v1264_v6 = vpop.eup %1263  ;;  %1216 = vmatmul.msk.f32.vlgmr.msrb.gmra.mxu3 %vm340_vm0, %v1262_v23  ;;  %891 = vmatpush.msra.mxu1 %v330_v10  ;;  %v551_v24 = vsel %vm340_vm0, %v1262_v23, 0.0 }
 0x122   : > { %v1266_v7 = vpop.eup %1265  ;;  %1267 = vpow2.f32 %v531_v4  ;;  %1215 = vmatmul.msk.f32.gmra.mxu2 %vm340_vm0, %v1264_v6  ;;  %v548_v34 = vsel %vm340_vm0, %v1264_v6, 0.0 }
 0x123   : > { %1269 = vpow2.f32 %v519_v5  ;;  %1213 = vmatmul.msk.f32.gmra.mxu1 %vm340_vm0, %v1266_v7  ;;  %v542_v21 = vsel %vm340_vm0, %v1266_v7, 0.0 }
 0x124   : > { %1271 = vrcp.f32 %v766_v43 }
 0x125   : > { %1273 = vrcp.f32 %v757_v49 }
 0x126   : > { %1275 = vrcp.f32 %v775_v51 }
 0x127   : > { %1277 = vrcp.f32 %v784_v63 }
 0x128   : > { %v1439_v8 = vpop.eup %1267 }
 0x129   : > { %v1270_v9 = vpop.eup %1269  ;;  %1217 = vmatmul.msk.f32.gmra.mxu3 %vm340_vm0, %v1439_v8  ;;  %v554_v14 = vsel %vm340_vm0, %v1439_v8, 0.0 }
 0x12a   : > { %1211 = vmatmul.msk.f32.gmra.mxu0 %vm340_vm0, %v1270_v9  ;;  %v536_v35 = vsel %vm340_vm0, %v1270_v9, 0.0  ;;  %v1272_v53 = vpop.eup %1271 }
 0x12b   : > { %v1274_v54 = vpop.eup %1273 }
 0x12c   : > { %v1276_v55 = vpop.eup %1275 }
 0x12d   : > { %v1278_v0 = vpop.eup %1277 }
 0x138   : > { %1237 = vset.pattern.permute.xlu1 %v1011_v11 }
 0x142   : > { %1236 = vset.pattern.permute.xlu0 %v1011_v11 }
 0x145   : > { %540 = vadd.xlane.f32.xlu1 %v539_v12 }
 0x14c   : > { %534 = vadd.xlane.f32.xlu0 %v533_v13 }
 0x14d   : > { %546 = vadd.xlane.f32.xlu1 %v545_v15  ;;  %1238 = vset.pattern.permute.xlu2 %v1011_v11 }
 0x154   : > { %543 = vadd.xlane.f32.xlu0 %v542_v21 }
 0x155   : > { %552 = vadd.xlane.f32.xlu1 %v551_v24 }
 0x15c   : > { %549 = vadd.xlane.f32.xlu0 %v548_v34  ;;  %537 = vadd.xlane.f32.xlu2 %v536_v35 }
 0x16c   : > { %v857_v52 = vpop.trf.xlu2 }
 0x16d   : > { %1219 = vmatmul.msk.f32.vlgmr.msra.gmra.mxu1 %vm817_vm1, %v857_v52 }
 0x16e   : > { %1020 = vperm.xlu1 %1237, %v1272_v53  }
 0x170   : > { %1014 = vperm.xlu0 %1236, %v1274_v54  }
 0x174   : > { %1026 = vperm.xlu2 %1238, %v1276_v55  }
 0x177   : > { %v967_v56 = vpop.trf.xlu0 }
 0x178   : > { %1221 = vmatmul.msk.f32.vlgmr.msra.gmra.mxu3 %vm817_vm1, %v967_v56 }
 0x17c   : > { %v912_v57 = vpop.trf.xlu2 }
 0x17d   : > { %1220 = vmatmul.msk.f32.vlgmr.msra.gmra.mxu2 %vm817_vm1, %v912_v57 }
 0x181   : > { %v801_v58 = vpop.trf.xlu1 }
 0x182   : > { %1218 = vmatmul.msk.f32.vlgmr.msra.gmra.mxu0 %vm817_vm1, %v801_v58 }
 0x18f   : > { %v580_v26 = vpop.f32.mrf.mxu0 }
 0x197   : > { %v609_v36 = vpop.f32.mrf.mxu1 }
 0x19c   : > { %v638_v4 = vpop.f32.mrf.mxu2 }
 0x19d   : > { %555 = vadd.xlane.f32.xlu2 %v554_v14 }
 0x1a0   : > { %v612_v20 = vpop.f32.mrf.mxu1 }
 0x1a4   : > { %v667_v22 = vpop.f32.mrf.mxu3 }
 0x1a5   : > { %v641_v24 = vpop.f32.mrf.mxu2 }
 0x1a7   : > { %v583_v17 = vpop.f32.mrf.mxu0 }
 0x1ac   : > { %v670_v39 = vpop.f32.mrf.mxu3 }
 0x1b5   : > { %1032 = vperm.xlu2 %1238, %v1278_v0  }
 0x1b8   : > { %v541_v16 = vpop.xlane.xlu1 %540 }
 0x1b9   : > { %1279 = vrcp.f32 %v541_v16 }
 0x1bf   : > { %v535_v1 = vpop.xlane.xlu0 %534  ;;  %v1280_v3 = vpop.eup %1279 }
 0x1c0   : > { %1281 = vrcp.f32 %v535_v1  ;;  %v547_v2 = vpop.xlane.xlu1 %546  ;;  %v683_v7 = vmul.f32 %v1280_v3, %v609_v36 }
 0x1c1   : > { %1283 = vrcp.f32 %v547_v2 }
 0x1c2   : > { %691 = vst.msk [vmem:[%s1479_s12 + $0x10] sm:$0xff] %vm340_vm0, %v683_v7 }
 0x1c6   : > { %v1282_v41 = vpop.eup %1281 }
 0x1c7   : > { %v1284_v23 = vpop.eup %1283  ;;  %v681_v5 = vmul.f32 %v1282_v41, %v580_v26  ;;  %v544_v6 = vpop.xlane.xlu0 %543 }
 0x1c8   : > { %v685_v8 = vmul.f32 %v1284_v23, %v638_v4  ;;  %v553_v9 = vpop.xlane.xlu1 %552 }
 0x1c9   : > { %689 = vst.msk [vmem:[%s1479_s12] sm:$0xff] %vm340_vm0, %v681_v5  ;;  %1285 = vrcp.f32 %v553_v9 }
 0x1ca   : > { %693 = vst.msk [vmem:[%s1479_s12 + $0x20] sm:$0xff] %vm340_vm0, %v685_v8  ;;  %1287 = vrcp.f32 %v544_v6 }
 0x1cf   : > { %v1286_v37 = vpop.eup %1285  ;;  %v538_v10 = vpop.xlane.xlu2 %537 }
 0x1d0   : > { %v550_v11 = vpop.xlane.xlu0 %549  ;;  %v687_v12 = vmul.f32 %v1286_v37, %v667_v22  ;;  %1289 = vrcp.f32 %v538_v10  ;;  %v1288_v13 = vpop.eup %1287 }
 0x1d1   : > { %1291 = vrcp.f32 %v550_v11  ;;  %v684_v25 = vmul.f32 %v1288_v13, %v612_v20 }
 0x1d2   : > { %695 = vst.msk [vmem:[%s1479_s12 + $0x30] sm:$0xff] %vm340_vm0, %v687_v12 }
 0x1d3   : > { %692 = vst.msk [vmem:[%s1479_s12 + $0x18] sm:$0xff] %vm340_vm0, %v684_v25 }
 0x1d6   : > { %v1290_v15 = vpop.eup %1289 }
 0x1d7   : > { %v1292_v18 = vpop.eup %1291  ;;  %v682_v21 = vmul.f32 %v1290_v15, %v583_v17  ;;  %v1027_v35 = vpop.permute.xlu2 %1026 }
 0x1d8   : > { %v686_v27 = vmul.f32 %v1292_v18, %v641_v24 }
 0x1d9   : > { %690 = vst.msk [vmem:[%s1479_s12 + $0x8] sm:$0xff] %vm340_vm0, %v682_v21 }
 0x1da   : > { %694 = vst.msk [vmem:[%s1479_s12 + $0x28] sm:$0xff] %vm340_vm0, %v686_v27 }
 0x1e0   : > { %v1021_v33 = vpop.permute.xlu1 %1020 }
 0x1e2   : > { %v1015_v30 = vpop.permute.xlu0 %1014 }
 0x1ea   : > { %v893_v28 = vpop.f32.mrf.mxu1 }
 0x1eb   : > { %v1035_v38 = vmul.f32 %v1021_v33, %v893_v28 }
 0x1ed   : > { %1039 = vst.msk [vmem:[%s314_s15 + $0x8] sm:$0xff] %vm340_vm0, %v1035_v38 }
 0x1fb   : > { %v1003_v42 = vpop.f32.mrf.mxu3 }
 0x1ff   : > { %v838_v32 = vpop.f32.mrf.mxu0 }
 0x200   : > { %v1034_v29 = vmul.f32 %v1015_v30, %v838_v32  ;;  %v948_v34 = vpop.f32.mrf.mxu2 }
 0x201   : > { %v1036_v31 = vmul.f32 %v1027_v35, %v948_v34 }
 0x202   : > { %1038 = vst.msk [vmem:[%s314_s15] sm:$0xff] %vm340_vm0, %v1034_v29 }
 0x203   : > { %1040 = vst.msk [vmem:[%s314_s15 + $0x10] sm:$0xff] %vm340_vm0, %v1036_v31 }
 0x210   : > { %v556_v40 = vpop.xlane.xlu2 %555 }
 0x211   : > { %1293 = vrcp.f32 %v556_v40 }
 0x217   : > { %v1294_v44 = vpop.eup %1293 }
 0x218   : > { %v688_v45 = vmul.f32 %v1294_v44, %v670_v39  ;;  %v1033_v46 = vpop.permute.xlu2 %1032 }
 0x219   : > { %v1037_v47 = vmul.f32 %v1033_v46, %v1003_v42 }
 0x21a   : > { %696 = vst.msk [vmem:[%s1479_s12 + $0x38] sm:$0xff] %vm340_vm0, %v688_v45 }
 0x21b   : > { %1041 = vst.msk [vmem:[%s314_s15 + $0x18] sm:$0xff] %vm340_vm0, %v1037_v47 }
 0x21c PF: > { %s16_s18 = sadd.s32 1, %s1301_s18  }
 0x21d   : > { %p13_p4 = scmp.ge.s32.totalorder %s16_s18, 4  }
 0x21f   :  { %15 = sbr.rel (!%p13_p4) target bundleno = 1 (0x1), region = 87 }

</bundles_post_ra>
